<compile_context>
chip_gen: v7x
topology: tpu7x:2x2x1
jax: 0.10.0
libtpu: 0.0.40
codegen_flags: <defaults>
</compile_context>

<pallas_src>
import functools
import math

import jax
import jax.numpy as jnp
import numpy as np
from jax.experimental import pallas as pl
from jax.experimental.pallas import tpu as pltpu


def _pdc_kernel(x_ref, halo_ref, w_ref, b_ref, o_ref, xin_ref, patch_ref, *,
                wp, k, cp, tile_n):
    """One pixel tile (TILE_N flattened padded-grid pixels, batch-fused).

    x_ref:     (Cp, TILE_N)            current tile of the flat padded image
    halo_ref:  (Cp, HALO_pad)          columns right after the tile (3x3 halo)
    w_ref:     (O, k*k*Cp)             tap-fused weights, center = -sum(neighbors)
    b_ref:     (O, 1)                  bias (f32)
    o_ref:     (O, TILE_N)             output tile on the padded pixel grid (f32)
    xin_ref:   (Cp, TILE_N+HALO_pad)   scratch: contiguous tile ++ halo
    patch_ref: (k*k*Cp, TILE_N)        scratch: taps stacked on contraction axis
    """
    # Contiguous view of the tile plus its halo (both stores are 128-lane aligned).
    xin_ref[:, :tile_n] = x_ref[...]
    xin_ref[:, tile_n:] = halo_ref[...]

    # Stack the k*k shifted taps along the sublane / contraction axis.
    for ki in range(k):
        for kj in range(k):
            tap = ki * k + kj
            off = ki * wp + kj                                    # static shift
            patch_ref[tap * cp:(tap + 1) * cp, :] = xin_ref[:, off:off + tile_n]

    # Single fused MXU matmul (K = k*k*Cp), f32 accumulation, then bias.
    acc = jnp.dot(w_ref[...], patch_ref[...], preferred_element_type=jnp.float32)
    o_ref[...] = (acc + b_ref[...]).astype(o_ref.dtype)


def pixel_difference_conv(x, weight, bias, *, kernel_size=3, padding=1,
                          compute_dtype=jnp.bfloat16, tile_target=1024):
    """Pixel-difference conv. x: (B,C,H,W) f32; weight: (O, C*(k*k-1)); bias: (O,)."""
    B, C, H, W = x.shape
    k = kernel_size
    kk = k * k
    num_nb = kk - 1
    c_idx = kk // 2
    O = weight.shape[0]
    assert weight.shape == (O, C * num_nb), weight.shape

    Hp, Wp = H + 2 * padding, W + 2 * padding
    H_out, W_out = Hp - k + 1, Wp - k + 1

    # Channel padding: 16 for sub-32-bit sublane packing, 8 for f32.
    c_align = 16 if jnp.dtype(compute_dtype).itemsize < 4 else 8
    Cp = -(-C // c_align) * c_align

    n_img = Hp * Wp                         # output produced on the padded grid
    n_total = B * n_img                     # batch fused on the flat pixel axis
    halo = (k - 1) * Wp + (k - 1)           # columns a k*k window reaches past a tile
    halo_pad = -(-halo // 128) * 128
    tile_n = min(tile_target, -(-n_total // 128) * 128)
    tile_n = max(tile_n, halo_pad)
    tile_n = -(-tile_n // halo_pad) * halo_pad      # halo_pad must divide tile_n
    num_tiles = -(-n_total // tile_n)
    n_total_pad = num_tiles * tile_n
    n_in = n_total_pad + halo_pad                   # + last tile's halo columns
    ratio = tile_n // halo_pad

    # ---- glue: reflect pad, channel-major flatten, cast, single zero-pad ----
    x_pad = jnp.pad(x, ((0, 0), (0, 0), (padding, padding), (padding, padding)),
                    mode="reflect")
    x_flat = jnp.transpose(x_pad.astype(compute_dtype), (1, 0, 2, 3)).reshape(C, n_total)
    x_flat = jnp.pad(x_flat, ((0, Cp - C), (0, n_in - n_total)))

    # ---- fold center subtraction into weights; fuse taps on the contraction dim ----
    w_resh = weight.astype(jnp.float32).reshape(O, C, num_nb)      # torch layout [o, c, nb]
    w_ctr = -jnp.sum(w_resh, axis=-1, keepdims=True)               # center tap
    w_all = jnp.concatenate(
        [w_resh[..., :c_idx], w_ctr, w_resh[..., c_idx:]], axis=-1)  # [o, c, tap]
    w_fused = jnp.pad(jnp.transpose(w_all, (0, 2, 1)), ((0, 0), (0, 0), (0, Cp - C)))
    w_fused = w_fused.reshape(O, kk * Cp).astype(compute_dtype)    # row = tap*Cp + c
    bias2 = bias.reshape(O, 1).astype(jnp.float32)

    kernel = functools.partial(_pdc_kernel, wp=Wp, k=k, cp=Cp, tile_n=tile_n)

    itemsize = jnp.dtype(compute_dtype).itemsize
    cost = pl.CostEstimate(
        flops=2 * O * kk * Cp * n_total_pad,
        transcendentals=0,
        bytes_accessed=(Cp * n_in * itemsize + O * kk * Cp * itemsize + O * 4
                        + O * n_total_pad * 4))

    out_flat = pl.pallas_call(
        kernel,
        out_shape=jax.ShapeDtypeStruct((O, n_total_pad), jnp.float32),
        grid_spec=pltpu.PrefetchScalarGridSpec(
            num_scalar_prefetch=0,
            grid=(num_tiles,),
            in_specs=[
                pl.BlockSpec((Cp, tile_n), lambda t: (0, t)),                  # tile body
                pl.BlockSpec((Cp, halo_pad), lambda t: (0, (t + 1) * ratio)),  # halo
                pl.BlockSpec((O, kk * Cp), lambda t: (0, 0)),                  # weights (resident)
                pl.BlockSpec((O, 1), lambda t: (0, 0)),                        # bias (resident)
            ],
            out_specs=pl.BlockSpec((O, tile_n), lambda t: (0, t)),
            scratch_shapes=[
                pltpu.VMEM((Cp, tile_n + halo_pad), compute_dtype),   # body ++ halo
                pltpu.VMEM((kk * Cp, tile_n), compute_dtype),         # stacked taps
            ],
        ),
        compiler_params=pltpu.CompilerParams(
            dimension_semantics=("parallel",)),
        cost_estimate=cost,
    )(x_flat, x_flat, w_fused, bias2)

    # Padded-grid, batch-fused layout -> NCHW (drop the garbage rows/cols).
    out = out_flat[:, :n_total].reshape(O, B, Hp, Wp)
    out = jnp.transpose(out, (1, 0, 2, 3))[:, :, :H_out, :W_out]
    return out.astype(x.dtype)


def pixel_difference_conv_ref(x, weight, bias, *, kernel_size=3, padding=1):
    """Pure-JAX f32 reference mirroring the PyTorch forward exactly (unfold path)."""
    B, C, H, W = x.shape
    k = kernel_size
    x_pad = jnp.pad(x, ((0, 0), (0, 0), (padding, padding), (padding, padding)),
                    mode="reflect")
    H_out = H + 2 * padding - k + 1
    W_out = W + 2 * padding - k + 1
    taps = []
    for ki in range(k):
        for kj in range(k):
            taps.append(x_pad[:, :, ki:ki + H_out, kj:kj + W_out])
    patches = jnp.stack(taps, axis=2)                       # (B, C, k*k, Ho, Wo)
    c_idx = (k * k) // 2
    center = patches[:, :, c_idx:c_idx + 1]
    neighbors = jnp.concatenate(
        [patches[:, :, :c_idx], patches[:, :, c_idx + 1:]], axis=2)
    diffs = (neighbors - center).reshape(B, C * (k * k - 1), H_out * W_out)
    out = jnp.einsum("ok,bkl->bol", weight, diffs,
                     precision=jax.lax.Precision.HIGHEST) + bias[None, :, None]
    return out.reshape(B, weight.shape[0], H_out, W_out)


def pixel_difference_conv_ref_folded(x, weight, bias, *, kernel_size=3, padding=1,
                                     compute_dtype=jnp.bfloat16):
    """Reference with the kernel's operand precision and center-fold (tight check)."""
    B, C, H, W = x.shape
    k = kernel_size
    kk = k * k
    num_nb = kk - 1
    c_idx = kk // 2
    O = weight.shape[0]
    w_resh = weight.astype(jnp.float32).reshape(O, C, num_nb)
    w_ctr = -jnp.sum(w_resh, axis=-1, keepdims=True)
    w_all = jnp.concatenate([w_resh[..., :c_idx], w_ctr, w_resh[..., c_idx:]], axis=-1)
    w_all = w_all.astype(compute_dtype).astype(jnp.float32)            # (O, C, k*k)
    x_pad = jnp.pad(x, ((0, 0), (0, 0), (padding, padding), (padding, padding)),
                    mode="reflect").astype(compute_dtype).astype(jnp.float32)
    H_out = H + 2 * padding - k + 1
    W_out = W + 2 * padding - k + 1
    out = jnp.zeros((B, O, H_out, W_out), jnp.float32)
    for ki in range(k):
        for kj in range(k):
            tap = x_pad[:, :, ki:ki + H_out, kj:kj + W_out]
            out = out + jnp.einsum("oc,bchw->bohw", w_all[:, :, ki * k + kj], tap,
                                   precision=jax.lax.Precision.HIGHEST)
    return out + bias[None, :, None, None]


def _run_case(key, B, C, H, W, O, padding):
    kx, kw = jax.random.split(key)
    x = jax.random.normal(kx, (B, C, H, W), dtype=jnp.float32)
    # kaiming_normal_(mode='fan_out'): std = sqrt(2 / fan_out); fan_out = O for 2-D weight.
    std = math.sqrt(2.0 / O)
    weight = jax.random.normal(kw, (O, C * 8), dtype=jnp.float32) * std
    bias = jnp.zeros((O,), dtype=jnp.float32)

    fn = jax.jit(functools.partial(pixel_difference_conv,
                                   kernel_size=3, padding=padding))
    out = jax.block_until_ready(fn(x, weight, bias))

    H_out = H + 2 * padding - 3 + 1
    W_out = W + 2 * padding - 3 + 1
    assert out.shape == (B, O, H_out, W_out), out.shape

    # Tight check vs. a reference that uses the same bf16 operand precision.
    ref_bf16 = pixel_difference_conv_ref_folded(x, weight, bias,
                                                kernel_size=3, padding=padding)
    np.testing.assert_allclose(np.asarray(out), np.asarray(ref_bf16),
                               atol=1e-2, rtol=1e-2)
    # Loose sanity check vs. the exact f32 PyTorch-semantics reference
    # (difference is only bf16 operand rounding).
    ref_f32 = pixel_difference_conv_ref(x, weight, bias,
                                        kernel_size=3, padding=padding)
    np.testing.assert_allclose(np.asarray(out), np.asarray(ref_f32),
                               atol=0.25, rtol=0.05)


if __name__ == "__main__":
    key = jax.random.PRNGKey(0)
    k1, k2 = jax.random.split(key)

    # Case 1: conv0 of LDCFeatureExtractor — PDC(3 -> 16), padding=1.
    _run_case(k1, B=2, C=3, H=16, W=16, O=16, padding=1)

    # Case 2: block2's first dense layer — PDC(16-ish -> 8), padding=2
    # (no dilation inside unfold, exactly as in the PyTorch module).
    _run_case(k2, B=2, C=16, H=8, W=8, O=8, padding=2)

    print("KERNEL_OK")
</pallas_src>

<mosaic_0001>
module attributes {stable_mosaic.version = 11 : i64} {
  func.func @_pdc_kernel(%arg0: i32, %arg1: memref<16x768xbf16, #tpu.memory_space<vmem>>, %arg2: memref<16x128xbf16, #tpu.memory_space<vmem>>, %arg3: memref<16x144xbf16, #tpu.memory_space<vmem>>, %arg4: memref<16x1xf32, #tpu.memory_space<vmem>>, %arg5: memref<16x768xf32, #tpu.memory_space<vmem>>, %arg6: memref<16x896xbf16, #tpu.memory_space<vmem>>, %arg7: memref<144x768xbf16, #tpu.memory_space<vmem>>) attributes {dimension_semantics = [#tpu.dimension_semantics<parallel>], iteration_bounds = array<i64: 1>, scalar_prefetch = 0 : i64, scratch_operands = 2 : i64, tpu.core_type = #tpu.core_type<tc>, window_params = [{transform_indices = @transform_0, window_bounds = array<i64: 16, 768>}, {transform_indices = @transform_1, window_bounds = array<i64: 16, 128>}, {pipeline_mode = #tpu.pipeline_mode<synchronous>, transform_indices = @transform_2, window_bounds = array<i64: 16, 144>}, {pipeline_mode = #tpu.pipeline_mode<synchronous>, transform_indices = @transform_3, window_bounds = array<i64: 16, 1>}, {transform_indices = @transform_4, window_bounds = array<i64: 16, 768>}]} {
    %c0 = arith.constant 0 : index
    %c0_0 = arith.constant 0 : index
    %0 = vector.load %arg1[%c0, %c0_0] : memref<16x768xbf16, #tpu.memory_space<vmem>>, vector<16x768xbf16>
    %c0_1 = arith.constant 0 : index
    %c0_2 = arith.constant 0 : index
    %1 = vector.load %arg6[%c0_1, %c0_2] : memref<16x896xbf16, #tpu.memory_space<vmem>>, vector<16x768xbf16>
    tpu.vector_store %arg6[%c0_1, %c0_2], %0 {strides = array<i32>} : memref<16x896xbf16, #tpu.memory_space<vmem>>, vector<16x768xbf16>,
    %c0_3 = arith.constant 0 : index
    %c0_4 = arith.constant 0 : index
    %2 = vector.load %arg2[%c0_3, %c0_4] : memref<16x128xbf16, #tpu.memory_space<vmem>>, vector<16x128xbf16>
    %c0_5 = arith.constant 0 : index
    %c768 = arith.constant 768 : index
    %3 = vector.load %arg6[%c0_5, %c768] : memref<16x896xbf16, #tpu.memory_space<vmem>>, vector<16x128xbf16>
    tpu.vector_store %arg6[%c0_5, %c768], %2 {strides = array<i32>} : memref<16x896xbf16, #tpu.memory_space<vmem>>, vector<16x128xbf16>,
    %c0_6 = arith.constant 0 : index
    %c0_7 = arith.constant 0 : index
    %4 = vector.load %arg6[%c0_6, %c0_7] : memref<16x896xbf16, #tpu.memory_space<vmem>>, vector<16x768xbf16>
    %c0_8 = arith.constant 0 : index
    %c0_9 = arith.constant 0 : index
    %5 = vector.load %arg7[%c0_8, %c0_9] : memref<144x768xbf16, #tpu.memory_space<vmem>>, vector<16x768xbf16>
    tpu.vector_store %arg7[%c0_8, %c0_9], %4 {strides = array<i32>} : memref<144x768xbf16, #tpu.memory_space<vmem>>, vector<16x768xbf16>,
    %c0_10 = arith.constant 0 : index
    %c1 = arith.constant 1 : index
    %6 = vector.load %arg6[%c0_10, %c1] : memref<16x896xbf16, #tpu.memory_space<vmem>>, vector<16x768xbf16>
    %c16 = arith.constant 16 : index
    %c0_11 = arith.constant 0 : index
    %7 = vector.load %arg7[%c16, %c0_11] : memref<144x768xbf16, #tpu.memory_space<vmem>>, vector<16x768xbf16>
    tpu.vector_store %arg7[%c16, %c0_11], %6 {strides = array<i32>} : memref<144x768xbf16, #tpu.memory_space<vmem>>, vector<16x768xbf16>,
    %c0_12 = arith.constant 0 : index
    %c2 = arith.constant 2 : index
    %8 = vector.load %arg6[%c0_12, %c2] : memref<16x896xbf16, #tpu.memory_space<vmem>>, vector<16x768xbf16>
    %c32 = arith.constant 32 : index
    %c0_13 = arith.constant 0 : index
    %9 = vector.load %arg7[%c32, %c0_13] : memref<144x768xbf16, #tpu.memory_space<vmem>>, vector<16x768xbf16>
    tpu.vector_store %arg7[%c32, %c0_13], %8 {strides = array<i32>} : memref<144x768xbf16, #tpu.memory_space<vmem>>, vector<16x768xbf16>,
    %c0_14 = arith.constant 0 : index
    %c18 = arith.constant 18 : index
    %10 = vector.load %arg6[%c0_14, %c18] : memref<16x896xbf16, #tpu.memory_space<vmem>>, vector<16x768xbf16>
    %c48 = arith.constant 48 : index
    %c0_15 = arith.constant 0 : index
    %11 = vector.load %arg7[%c48, %c0_15] : memref<144x768xbf16, #tpu.memory_space<vmem>>, vector<16x768xbf16>
    tpu.vector_store %arg7[%c48, %c0_15], %10 {strides = array<i32>} : memref<144x768xbf16, #tpu.memory_space<vmem>>, vector<16x768xbf16>,
    %c0_16 = arith.constant 0 : index
    %c19 = arith.constant 19 : index
    %12 = vector.load %arg6[%c0_16, %c19] : memref<16x896xbf16, #tpu.memory_space<vmem>>, vector<16x768xbf16>
    %c64 = arith.constant 64 : index
    %c0_17 = arith.constant 0 : index
    %13 = vector.load %arg7[%c64, %c0_17] : memref<144x768xbf16, #tpu.memory_space<vmem>>, vector<16x768xbf16>
    tpu.vector_store %arg7[%c64, %c0_17], %12 {strides = array<i32>} : memref<144x768xbf16, #tpu.memory_space<vmem>>, vector<16x768xbf16>,
    %c0_18 = arith.constant 0 : index
    %c20 = arith.constant 20 : index
    %14 = vector.load %arg6[%c0_18, %c20] : memref<16x896xbf16, #tpu.memory_space<vmem>>, vector<16x768xbf16>
    %c80 = arith.constant 80 : index
    %c0_19 = arith.constant 0 : index
    %15 = vector.load %arg7[%c80, %c0_19] : memref<144x768xbf16, #tpu.memory_space<vmem>>, vector<16x768xbf16>
    tpu.vector_store %arg7[%c80, %c0_19], %14 {strides = array<i32>} : memref<144x768xbf16, #tpu.memory_space<vmem>>, vector<16x768xbf16>,
    %c0_20 = arith.constant 0 : index
    %c36 = arith.constant 36 : index
    %16 = vector.load %arg6[%c0_20, %c36] : memref<16x896xbf16, #tpu.memory_space<vmem>>, vector<16x768xbf16>
    %c96 = arith.constant 96 : index
    %c0_21 = arith.constant 0 : index
    %17 = vector.load %arg7[%c96, %c0_21] : memref<144x768xbf16, #tpu.memory_space<vmem>>, vector<16x768xbf16>
    tpu.vector_store %arg7[%c96, %c0_21], %16 {strides = array<i32>} : memref<144x768xbf16, #tpu.memory_space<vmem>>, vector<16x768xbf16>,
    %c0_22 = arith.constant 0 : index
    %c37 = arith.constant 37 : index
    %18 = vector.load %arg6[%c0_22, %c37] : memref<16x896xbf16, #tpu.memory_space<vmem>>, vector<16x768xbf16>
    %c112 = arith.constant 112 : index
    %c0_23 = arith.constant 0 : index
    %19 = vector.load %arg7[%c112, %c0_23] : memref<144x768xbf16, #tpu.memory_space<vmem>>, vector<16x768xbf16>
    tpu.vector_store %arg7[%c112, %c0_23], %18 {strides = array<i32>} : memref<144x768xbf16, #tpu.memory_space<vmem>>, vector<16x768xbf16>,
    %c0_24 = arith.constant 0 : index
    %c38 = arith.constant 38 : index
    %20 = vector.load %arg6[%c0_24, %c38] : memref<16x896xbf16, #tpu.memory_space<vmem>>, vector<16x768xbf16>
    %c128 = arith.constant 128 : index
    %c0_25 = arith.constant 0 : index
    %21 = vector.load %arg7[%c128, %c0_25] : memref<144x768xbf16, #tpu.memory_space<vmem>>, vector<16x768xbf16>
    tpu.vector_store %arg7[%c128, %c0_25], %20 {strides = array<i32>} : memref<144x768xbf16, #tpu.memory_space<vmem>>, vector<16x768xbf16>,
    %c0_26 = arith.constant 0 : index
    %c0_27 = arith.constant 0 : index
    %22 = vector.load %arg3[%c0_26, %c0_27] : memref<16x144xbf16, #tpu.memory_space<vmem>>, vector<16x144xbf16>
    %c0_28 = arith.constant 0 : index
    %c0_29 = arith.constant 0 : index
    %23 = vector.load %arg7[%c0_28, %c0_29] : memref<144x768xbf16, #tpu.memory_space<vmem>>, vector<144x768xbf16>
    %cst = arith.constant dense<0.000000e+00> : vector<16x768xf32>
    %24 = tpu.matmul %22, %23, %cst {dimension_numbers = #tpu.dot_dimension_numbers<[1], [0], [0], [1], [0, 0, 1, 1], [], []>} : vector<16x144xbf16>, vector<144x768xbf16>, vector<16x768xf32> -> vector<16x768xf32>
    %c0_30 = arith.constant 0 : index
    %c0_31 = arith.constant 0 : index
    %25 = vector.load %arg4[%c0_30, %c0_31] : memref<16x1xf32, #tpu.memory_space<vmem>>, vector<16x1xf32>
    %26 = vector.broadcast %25 : vector<16x1xf32> to vector<16x768xf32>
    %27 = arith.addf %24, %26 : vector<16x768xf32>
    %c0_32 = arith.constant 0 : index
    %c0_33 = arith.constant 0 : index
    %28 = vector.load %arg5[%c0_32, %c0_33] : memref<16x768xf32, #tpu.memory_space<vmem>>, vector<16x768xf32>
    tpu.vector_store %arg5[%c0_32, %c0_33], %27 {strides = array<i32>} : memref<16x768xf32, #tpu.memory_space<vmem>>, vector<16x768xf32>,
    return
  }
  func.func @transform_0(%arg0: i32) -> (i32, i32) {
    %c0_i32 = arith.constant 0 : i32
    %c0_i32_0 = arith.constant 0 : i32
    return %c0_i32, %arg0 : i32, i32
  }
  func.func @transform_1(%arg0: i32) -> (i32, i32) {
    %c1_i32 = arith.constant 1 : i32
    %0 = arith.addi %arg0, %c1_i32 : i32
    %c6_i32 = arith.constant 6 : i32
    %1 = arith.muli %0, %c6_i32 : i32
    %c0_i32 = arith.constant 0 : i32
    %c0_i32_0 = arith.constant 0 : i32
    return %c0_i32, %1 : i32, i32
  }
  func.func @transform_2(%arg0: i32) -> (i32, i32) {
    %c0_i32 = arith.constant 0 : i32
    %c0_i32_0 = arith.constant 0 : i32
    %c0_i32_1 = arith.constant 0 : i32
    return %c0_i32, %c0_i32_0 : i32, i32
  }
  func.func @transform_3(%arg0: i32) -> (i32, i32) {
    %c0_i32 = arith.constant 0 : i32
    %c0_i32_0 = arith.constant 0 : i32
    %c0_i32_1 = arith.constant 0 : i32
    return %c0_i32, %c0_i32_0 : i32, i32
  }
  func.func @transform_4(%arg0: i32) -> (i32, i32) {
    %c0_i32 = arith.constant 0 : i32
    %c0_i32_0 = arith.constant 0 : i32
    return %c0_i32, %arg0 : i32, i32
  }
}

</mosaic_0001>

<bundles_post_ra>
// kernel: pixel_difference_conv.1
= control target key start
LH: loop header
LB: loop body
LE: loop exit
PB: predicated region body
PF: predicated region fallthrough
CT: control target
= control target key end

     0   :  { %s810_s19 = smov 127   ;;  %s811_s28 = smov 126   ;;  %vm614_vm0 = vcmask 130048   ;;  %v818_v10 = vmov 0   ;;  %vm189_vm1 = vcmask 1039360   ;;  %vm236_vm2 = vcmask 1031168   ;;  %s1098_s0 = inlined_call_operand.vmem [shape: bf16[16,896], index: 0, kind: input, shape index: {}, may-alias: {0,1}]   ;;  %s1099_s1 = inlined_call_operand.vmem [shape: bf16[16,896], index: 1, kind: input, shape index: {}, may-alias: {0,1}]   ;;  %s1100_s2 = inlined_call_operand.vmem [shape: bf16[16,144], index: 2, kind: input, shape index: {}]   ;;  %s1101_s3 = inlined_call_operand.vmem [shape: f32[16,1], index: 3, kind: input, shape index: {}]   ;;  %s1102_s4 = inlined_call_operand.vmem [shape: f32[16,768], index: 4, kind: output, shape index: {}]  }
   0x1   :  { %v797_v0 = vld [vmem:[%s1098_s0 + $0x4] ss:$28 sps:$4 sm:$0xff]   ;;  %v857_v3 = vld [vmem:[%s1098_s0 + $0xc] ss:$28 sps:$4 sm:$0xff]   ;;  %v772_v4 = vld [vmem:[%s1099_s1 + $0x18] sm:$0xf]  ;;  %796 = vset.pattern.permute.xlu1 %v818_v10  ;;  %795 = vset.pattern.permute.xlu0 %v818_v10 }
   0x2   :  { %v799_v1 = vld [vmem:[%s1098_s0] ss:$28 sps:$4 sm:$0xff]   ;;  %177 = vrot.lane.b32.xlu0 %v797_v0, %s810_s19  ;;  %v800_v2 = vld [vmem:[%s1098_s0 + $0x8] ss:$28 sps:$4 sm:$0xff]   ;;  %618 = vmatprep.subr.bf16.mxu0 %v797_v0  ;;  %v773_v5 = vld [vmem:[%s1099_s1 + $0x34] sm:$0xf] }
   0x3   :  { %175 = vrot.lane.b32.xlu1 %v799_v1, %s810_s19  ;;  %619 = vmatpush1.bf16.msra.mxu0 %v799_v1  ;;  %60 = vst [vmem:[#allocation5] sm:$0xf] %v772_v4  ;;  %62 = vst [vmem:[#allocation5 + $0x4] sm:$0xf] %v773_v5  ;;  %s812_s29 = smov 110   ;;  %s813_s1 = smov 109  }
   0x4   :  { %661 = vmatprep.subr.bf16.mxu1 %v857_v3  ;;  %s814_s30 = smov 108   ;;  %s815_s5 = smov 92   ;;  %v886_v6 = vld [vmem:[%s1100_s2 + $0x4] ss:$8 sps:$4 sm:$0xff]   ;;  %v908_v8 = vld [vmem:[%s1098_s0 + $0x14] ss:$28 sps:$4 sm:$0xff]  }
   0x5   :  { %662 = vmatpush1.bf16.msra.mxu1 %v800_v2  ;;  %s816_s8 = smov 91   ;;  %783 = vmatprep.mubr.msk.bf16.mxu0 %vm614_vm0, %v886_v6  ;;  %s817_s9 = smov 90   ;;  %v901_v7 = vld [vmem:[%s1098_s0 + $0x10] ss:$28 sps:$4 sm:$0xff]   ;;  %v593_v11 = vld [vmem:[%s1101_s3] sm:$0xff]  ;;  %vm283_vm3 = vcmask 900096  }
   0x6   :  { %179 = vrot.lane.b32.xlu0 %v800_v2, %s810_s19  ;;  %784 = vmatprep.mubr.msk.bf16.mxu1 %vm614_vm0, %v886_v6  ;;  %v594_v12 = vld [vmem:[%s1101_s3 + $0x8] sm:$0xff]  ;;  %vm330_vm4 = vcmask 891904   ;;  %vm377_vm5 = vcmask 883712   ;;  %vm424_vm6 = vcmask 752640   ;;  %vm471_vm7 = vcmask 744448  }
   0x7   :  { %224 = vrot.lane.b32.xlu1 %v797_v0, %s811_s28  ;;  %vm518_vm8 = vcmask 736256   ;;  %v1013_v53 = vld [vmem:[%s1100_s2] ss:$8 sps:$4 sm:$0xff]  }
   0xa   :  { %226 = vrot.lane.b32.xlu0 %v800_v2, %s811_s28  ;;  %v806_v9 = vld [vmem:[#allocation5] sm:$0xff]  }
   0xb   :  { %222 = vrot.lane.b32.xlu1 %v799_v1, %s811_s28 }
   0xe   :  { %271 = vrot.lane.b32.xlu0 %v797_v0, %s812_s29 }
   0xf   :  { %273 = vrot.lane.b32.xlu1 %v800_v2, %s812_s29 }
  0x12   :  { %269 = vrot.lane.b32.xlu0 %v799_v1, %s812_s29 }
  0x13   :  { %318 = vrot.lane.b32.xlu1 %v797_v0, %s813_s1 }
  0x16   :  { %320 = vrot.lane.b32.xlu0 %v800_v2, %s813_s1 }
  0x17   :  { %316 = vrot.lane.b32.xlu1 %v799_v1, %s813_s1 }
  0x1a   :  { %365 = vrot.lane.b32.xlu0 %v797_v0, %s814_s30 }
  0x1b   :  { %367 = vrot.lane.b32.xlu1 %v800_v2, %s814_s30 }
  0x1e   :  { %363 = vrot.lane.b32.xlu0 %v799_v1, %s814_s30 }
  0x1f   :  { %412 = vrot.lane.b32.xlu1 %v797_v0, %s815_s5 }
  0x22   :  { %414 = vrot.lane.b32.xlu0 %v800_v2, %s815_s5 }
  0x23   :  { %410 = vrot.lane.b32.xlu1 %v799_v1, %s815_s5 }
  0x26   :  { %459 = vrot.lane.b32.xlu0 %v797_v0, %s816_s8 }
  0x27   :  { %461 = vrot.lane.b32.xlu1 %v800_v2, %s816_s8 }
  0x2a   :  { %457 = vrot.lane.b32.xlu0 %v799_v1, %s816_s8 }
  0x2b   :  { %506 = vrot.lane.b32.xlu1 %v797_v0, %s817_s9 }
  0x2e   :  { %508 = vrot.lane.b32.xlu0 %v800_v2, %s817_s9 }
  0x2f   :  { %504 = vrot.lane.b32.xlu1 %v799_v1, %s817_s9 }
  0x32   :  { %181 = vrot.lane.b32.xlu0 %v857_v3, %s810_s19 }
  0x33   :  { %183 = vrot.lane.b32.xlu1 %v901_v7, %s810_s19 }
  0x36   :  { %185 = vrot.lane.b32.xlu0 %v908_v8, %s810_s19 }
  0x37   :  { %187 = vrot.lane.b32.xlu1 %v806_v9, %s810_s19 }
  0x3a   :  { %228 = vrot.lane.b32.xlu0 %v857_v3, %s811_s28 }
  0x3b   :  { %230 = vrot.lane.b32.xlu1 %v901_v7, %s811_s28 }
  0x3e   :  { %232 = vrot.lane.b32.xlu0 %v908_v8, %s811_s28 }
  0x3f   :  { %234 = vrot.lane.b32.xlu1 %v806_v9, %s811_s28 }
  0x42   :  { %275 = vrot.lane.b32.xlu0 %v857_v3, %s812_s29 }
  0x43   :  { %277 = vrot.lane.b32.xlu1 %v901_v7, %s812_s29 }
  0x46   :  { %279 = vrot.lane.b32.xlu0 %v908_v8, %s812_s29 }
  0x47   :  { %281 = vrot.lane.b32.xlu1 %v806_v9, %s812_s29 }
  0x4a   :  { %322 = vrot.lane.b32.xlu0 %v857_v3, %s813_s1 }
  0x4b   :  { %324 = vrot.lane.b32.xlu1 %v901_v7, %s813_s1 }
  0x4e   :  { %326 = vrot.lane.b32.xlu0 %v908_v8, %s813_s1 }
  0x4f   :  { %328 = vrot.lane.b32.xlu1 %v806_v9, %s813_s1 }
  0x52   :  { %369 = vrot.lane.b32.xlu0 %v857_v3, %s814_s30 }
  0x53   :  { %371 = vrot.lane.b32.xlu1 %v901_v7, %s814_s30 }
  0x56   :  { %373 = vrot.lane.b32.xlu0 %v908_v8, %s814_s30 }
  0x57   :  { %375 = vrot.lane.b32.xlu1 %v806_v9, %s814_s30 }
  0x5a   :  { %416 = vrot.lane.b32.xlu0 %v857_v3, %s815_s5 }
  0x5b   :  { %418 = vrot.lane.b32.xlu1 %v901_v7, %s815_s5 }
  0x5e   :  { %420 = vrot.lane.b32.xlu0 %v908_v8, %s815_s5 }
  0x5f   :  { %422 = vrot.lane.b32.xlu1 %v806_v9, %s815_s5 }
  0x62   :  { %463 = vrot.lane.b32.xlu0 %v857_v3, %s816_s8 }
  0x63   :  { %465 = vrot.lane.b32.xlu1 %v901_v7, %s816_s8 }
  0x66   :  { %467 = vrot.lane.b32.xlu0 %v908_v8, %s816_s8 }
  0x67   :  { %469 = vrot.lane.b32.xlu1 %v806_v9, %s816_s8 }
  0x6a   :  { %510 = vrot.lane.b32.xlu0 %v857_v3, %s817_s9 }
  0x6b   :  { %512 = vrot.lane.b32.xlu1 %v901_v7, %s817_s9 }
  0x6e   :  { %514 = vrot.lane.b32.xlu0 %v908_v8, %s817_s9 }
  0x6f   :  { %516 = vrot.lane.b32.xlu1 %v806_v9, %s817_s9 }
  0x72   :  { %597 = vperm.xlu0 %795, %v593_v11  }
  0x73   :  { %602 = vperm.xlu1 %796, %v594_v12  }
  0x74   :  { %v178_v13 = vpop.permute.xlu0 %177 }
  0x75   :  { %v176_v14 = vpop.permute.xlu1 %175 }
  0x76   :  { %v190_v18 = vsel %vm189_vm1, %v176_v14, %v178_v13 }
  0x78   :  { %v970_v15 = vpop.permute.xlu0 %179 }
  0x79   :  { %v225_v16 = vpop.permute.xlu1 %224  ;;  %v191_v17 = vsel %vm189_vm1, %v178_v13, %v970_v15 }
  0x7a   :  { %620 = vmatprep.subr.bf16.mxu0 %v191_v17 }
  0x7b   :  { %621 = vmatpush1.bf16.msra.mxu0 %v190_v18 }
  0x7c   :  { %v975_v19 = vpop.permute.xlu0 %226 }
  0x7d   :  { %v223_v20 = vpop.permute.xlu1 %222  ;;  %v238_v21 = vsel %vm236_vm2, %v225_v16, %v975_v19 }
  0x7e   :  { %622 = vmatprep.subr.bf16.mxu0 %v238_v21  ;;  %v237_v22 = vsel %vm236_vm2, %v223_v20, %v225_v16 }
  0x7f   :  { %623 = vmatpush1.bf16.msra.mxu0 %v237_v22 }
  0x80   :  { %v272_v23 = vpop.permute.xlu0 %271 }
  0x81   :  { %v980_v24 = vpop.permute.xlu1 %273 }
  0x82   :  { %v285_v25 = vsel %vm283_vm3, %v272_v23, %v980_v24 }
  0x83   :  { %624 = vmatprep.subr.bf16.mxu0 %v285_v25 }
  0x84   :  { %v270_v26 = vpop.permute.xlu0 %269 }
  0x85   :  { %v319_v27 = vpop.permute.xlu1 %318  ;;  %v284_v28 = vsel %vm283_vm3, %v270_v26, %v272_v23 }
  0x86   :  { %625 = vmatpush1.bf16.msra.mxu0 %v284_v28 }
  0x88   :  { %v985_v29 = vpop.permute.xlu0 %320 }
  0x89   :  { %v317_v30 = vpop.permute.xlu1 %316  ;;  %v332_v31 = vsel %vm330_vm4, %v319_v27, %v985_v29 }
  0x8a   :  { %626 = vmatprep.subr.bf16.mxu0 %v332_v31  ;;  %v331_v32 = vsel %vm330_vm4, %v317_v30, %v319_v27 }
  0x8b   :  { %627 = vmatpush1.bf16.msra.mxu0 %v331_v32 }
  0x8c   :  { %v366_v33 = vpop.permute.xlu0 %365 }
  0x8d   :  { %v990_v34 = vpop.permute.xlu1 %367 }
  0x8e   :  { %v379_v35 = vsel %vm377_vm5, %v366_v33, %v990_v34 }
  0x8f   :  { %628 = vmatprep.subr.bf16.mxu0 %v379_v35 }
  0x90   :  { %v364_v36 = vpop.permute.xlu0 %363 }
  0x91   :  { %v413_v37 = vpop.permute.xlu1 %412  ;;  %v378_v38 = vsel %vm377_vm5, %v364_v36, %v366_v33 }
  0x92   :  { %629 = vmatpush1.bf16.msra.mxu0 %v378_v38 }
  0x94   :  { %v995_v39 = vpop.permute.xlu0 %414 }
  0x95   :  { %v411_v40 = vpop.permute.xlu1 %410  ;;  %v426_v41 = vsel %vm424_vm6, %v413_v37, %v995_v39 }
  0x96   :  { %630 = vmatprep.subr.bf16.mxu0 %v426_v41  ;;  %v425_v42 = vsel %vm424_vm6, %v411_v40, %v413_v37 }
  0x97   :  { %631 = vmatpush1.bf16.msra.mxu0 %v425_v42 }
  0x98   :  { %v460_v43 = vpop.permute.xlu0 %459 }
  0x99   :  { %v1000_v44 = vpop.permute.xlu1 %461 }
  0x9a   :  { %v473_v45 = vsel %vm471_vm7, %v460_v43, %v1000_v44 }
  0x9b   :  { %632 = vmatprep.subr.bf16.mxu0 %v473_v45 }
  0x9c   :  { %v458_v46 = vpop.permute.xlu0 %457 }
  0x9d   :  { %v507_v47 = vpop.permute.xlu1 %506  ;;  %v472_v48 = vsel %vm471_vm7, %v458_v46, %v460_v43 }
  0x9e   :  { %633 = vmatpush1.bf16.msra.mxu0 %v472_v48 }
  0xa0   :  { %v1005_v49 = vpop.permute.xlu0 %508 }
  0xa1   :  { %v505_v50 = vpop.permute.xlu1 %504  ;;  %v520_v51 = vsel %vm518_vm8, %v507_v47, %v1005_v49 }
  0xa2   :  { %634 = vmatprep.subr.bf16.mxu0 %v520_v51  ;;  %v519_v52 = vsel %vm518_vm8, %v505_v50, %v507_v47 }
  0xa3   :  { %635 = vmatpush1.bf16.msra.mxu0 %v519_v52 }
  0xa4   :  { %v182_v54 = vpop.permute.xlu0 %181  ;;  %704 = vmatprep.subr.bf16.mxu0 %v908_v8 }
  0xa5   :  { %v184_v55 = vpop.permute.xlu1 %183  ;;  %v192_v56 = vsel %vm189_vm1, %v970_v15, %v182_v54 }
  0xa6   :  { %v193_v57 = vsel %vm189_vm1, %v182_v54, %v184_v55  ;;  %651 = vmatmul.mubr.bf16.vlgmr.msra.gmra.mrb[0].mxu0 %v1013_v53 }
  0xa7   :  { %663 = vmatprep.subr.bf16.mxu1 %v193_v57  ;;  %705 = vmatpush1.bf16.msra.mxu0 %v901_v7 }
  0xa8   :  { %664 = vmatpush1.bf16.msra.mxu1 %v192_v56  ;;  %v186_v58 = vpop.permute.xlu0 %185  ;;  %785 = vmatprep.mubr.msk.bf16.mxu0 %vm614_vm0, %v886_v6 }
  0xa9   :  { %v194_v59 = vsel %vm189_vm1, %v184_v55, %v186_v58  ;;  %v188_v60 = vpop.permute.xlu1 %187 }
  0xaa   :  { %v195_v61 = vsel %vm189_vm1, %v186_v58, %v188_v60 }
  0xab   :  { %706 = vmatprep.subr.bf16.mxu0 %v195_v61 }
  0xac   :  { %707 = vmatpush1.bf16.msra.mxu0 %v194_v59  ;;  %v229_v62 = vpop.permute.xlu0 %228 }
  0xad   :  { %v231_v63 = vpop.permute.xlu1 %230  ;;  %v239_v0 = vsel %vm236_vm2, %v975_v19, %v229_v62 }
  0xae   :  { %v240_v1 = vsel %vm236_vm2, %v229_v62, %v231_v63 }
  0xaf   :  { %665 = vmatprep.subr.bf16.mxu1 %v240_v1 }
  0xb0   :  { %666 = vmatpush1.bf16.msra.mxu1 %v239_v0  ;;  %v233_v2 = vpop.permute.xlu0 %232 }
  0xb1   :  { %v241_v3 = vsel %vm236_vm2, %v231_v63, %v233_v2  ;;  %v235_v4 = vpop.permute.xlu1 %234 }
  0xb2   :  { %v242_v5 = vsel %vm236_vm2, %v233_v2, %v235_v4 }
  0xb3   :  { %708 = vmatprep.subr.bf16.mxu0 %v242_v5 }
  0xb4   :  { %709 = vmatpush1.bf16.msra.mxu0 %v241_v3  ;;  %v276_v6 = vpop.permute.xlu0 %275 }
  0xb5   :  { %v278_v7 = vpop.permute.xlu1 %277  ;;  %v286_v8 = vsel %vm283_vm3, %v980_v24, %v276_v6 }
  0xb6   :  { %v287_v9 = vsel %vm283_vm3, %v276_v6, %v278_v7 }
  0xb7   :  { %667 = vmatprep.subr.bf16.mxu1 %v287_v9 }
  0xb8   :  { %668 = vmatpush1.bf16.msra.mxu1 %v286_v8  ;;  %v280_v10 = vpop.permute.xlu0 %279 }
  0xb9   :  { %v288_v11 = vsel %vm283_vm3, %v278_v7, %v280_v10  ;;  %v282_v12 = vpop.permute.xlu1 %281 }
  0xba   :  { %v289_v13 = vsel %vm283_vm3, %v280_v10, %v282_v12 }
  0xbb   :  { %710 = vmatprep.subr.bf16.mxu0 %v289_v13 }
  0xbc   :  { %711 = vmatpush1.bf16.msra.mxu0 %v288_v11  ;;  %v323_v14 = vpop.permute.xlu0 %322 }
  0xbd   :  { %v325_v15 = vpop.permute.xlu1 %324  ;;  %v333_v16 = vsel %vm330_vm4, %v985_v29, %v323_v14 }
  0xbe   :  { %v334_v17 = vsel %vm330_vm4, %v323_v14, %v325_v15 }
  0xbf   :  { %669 = vmatprep.subr.bf16.mxu1 %v334_v17 }
  0xc0   :  { %670 = vmatpush1.bf16.msra.mxu1 %v333_v16  ;;  %v327_v18 = vpop.permute.xlu0 %326 }
  0xc1   :  { %v335_v19 = vsel %vm330_vm4, %v325_v15, %v327_v18  ;;  %v329_v20 = vpop.permute.xlu1 %328 }
  0xc2   :  { %v336_v21 = vsel %vm330_vm4, %v327_v18, %v329_v20 }
  0xc3   :  { %712 = vmatprep.subr.bf16.mxu0 %v336_v21 }
  0xc4   :  { %713 = vmatpush1.bf16.msra.mxu0 %v335_v19  ;;  %v370_v22 = vpop.permute.xlu0 %369 }
  0xc5   :  { %v372_v23 = vpop.permute.xlu1 %371  ;;  %v380_v24 = vsel %vm377_vm5, %v990_v34, %v370_v22 }
  0xc6   :  { %v381_v25 = vsel %vm377_vm5, %v370_v22, %v372_v23 }
  0xc7   :  { %671 = vmatprep.subr.bf16.mxu1 %v381_v25 }
  0xc8   :  { %672 = vmatpush1.bf16.msra.mxu1 %v380_v24  ;;  %v374_v26 = vpop.permute.xlu0 %373 }
  0xc9   :  { %v382_v27 = vsel %vm377_vm5, %v372_v23, %v374_v26  ;;  %v376_v28 = vpop.permute.xlu1 %375 }
  0xca   :  { %v383_v29 = vsel %vm377_vm5, %v374_v26, %v376_v28 }
  0xcb   :  { %714 = vmatprep.subr.bf16.mxu0 %v383_v29 }
  0xcc   :  { %715 = vmatpush1.bf16.msra.mxu0 %v382_v27  ;;  %v417_v30 = vpop.permute.xlu0 %416 }
  0xcd   :  { %v419_v31 = vpop.permute.xlu1 %418  ;;  %v427_v32 = vsel %vm424_vm6, %v995_v39, %v417_v30 }
  0xce   :  { %v428_v33 = vsel %vm424_vm6, %v417_v30, %v419_v31 }
  0xcf   :  { %673 = vmatprep.subr.bf16.mxu1 %v428_v33 }
  0xd0   :  { %674 = vmatpush1.bf16.msra.mxu1 %v427_v32  ;;  %v421_v34 = vpop.permute.xlu0 %420 }
  0xd1   :  { %v429_v35 = vsel %vm424_vm6, %v419_v31, %v421_v34  ;;  %v423_v36 = vpop.permute.xlu1 %422 }
  0xd2   :  { %v430_v37 = vsel %vm424_vm6, %v421_v34, %v423_v36 }
  0xd3   :  { %716 = vmatprep.subr.bf16.mxu0 %v430_v37 }
  0xd4   :  { %717 = vmatpush1.bf16.msra.mxu0 %v429_v35  ;;  %v464_v38 = vpop.permute.xlu0 %463 }
  0xd5   :  { %v466_v40 = vpop.permute.xlu1 %465  ;;  %v474_v41 = vsel %vm471_vm7, %v1000_v44, %v464_v38 }
  0xd6   :  { %v475_v42 = vsel %vm471_vm7, %v464_v38, %v466_v40 }
  0xd7   :  { %675 = vmatprep.subr.bf16.mxu1 %v475_v42 }
  0xd8   :  { %676 = vmatpush1.bf16.msra.mxu1 %v474_v41  ;;  %v468_v39 = vpop.permute.xlu0 %467 }
  0xd9   :  { %v476_v43 = vsel %vm471_vm7, %v466_v40, %v468_v39  ;;  %v470_v45 = vpop.permute.xlu1 %469 }
  0xda   :  { %v477_v46 = vsel %vm471_vm7, %v468_v39, %v470_v45 }
  0xdb   :  { %718 = vmatprep.subr.bf16.mxu0 %v477_v46 }
  0xdc   :  { %719 = vmatpush1.bf16.msra.mxu0 %v476_v43  ;;  %v511_v47 = vpop.permute.xlu0 %510 }
  0xdd   :  { %v513_v48 = vpop.permute.xlu1 %512  ;;  %v521_v50 = vsel %vm518_vm8, %v1005_v49, %v511_v47 }
  0xde   :  { %v522_v51 = vsel %vm518_vm8, %v511_v47, %v513_v48 }
  0xdf   :  { %677 = vmatprep.subr.bf16.mxu1 %v522_v51 }
  0xe0   :  { %678 = vmatpush1.bf16.msra.mxu1 %v521_v50  ;;  %v515_v44 = vpop.permute.xlu0 %514 }
  0xe1   :  { %v523_v52 = vsel %vm518_vm8, %v513_v48, %v515_v44  ;;  %v517_v54 = vpop.permute.xlu1 %516 }
  0xe2   :  { %v524_v55 = vsel %vm518_vm8, %v515_v44, %v517_v54 }
  0xe3   :  { %720 = vmatprep.subr.bf16.mxu0 %v524_v55  ;;  %694 = vmatmul.mubr.bf16.vlgmr.msra.gmra.mrb[0].mxu1 %v1013_v53 }
  0xe4   :  { %721 = vmatpush1.bf16.msra.mxu0 %v523_v52 }
  0xe7   :  { %737 = vmatmul.mubr.bf16.vlgmr.msra.gmra.mrb[4].mxu0 %v1013_v53 }
  0xf1   :  { %v598_v56 = vpop.permute.xlu0 %597 }
  0xf2   :  { %v603_v58 = vpop.permute.xlu1 %602 }
 0x179   :  { %v652_v57 = vpop.f32.mrb[0].mxu0 }
 0x17a   :  { %v654_v49 = vpop.f32.mrb[1].mxu0  ;;  %v653_v59 = vadd.f32 %v652_v57, %v598_v56 }
 0x17b   :  { %v656_v60 = vpop.f32.mrb[2].mxu0  ;;  %v655_v61 = vadd.f32 %v654_v49, %v598_v56 }
 0x17c   :  { %747 = vst [vmem:[%s1102_s4] sm:$0xff] %v653_v59  ;;  %v657_v62 = vadd.f32 %v656_v60, %v603_v58  ;;  %v658_v63 = vpop.f32.mrb[3].mxu0 }
 0x17d   :  { %748 = vst [vmem:[%s1102_s4 + $0x8] sm:$0xff] %v655_v61  ;;  %v659_v0 = vadd.f32 %v658_v63, %v603_v58 }
 0x17e   :  { %753 = vst [vmem:[%s1102_s4 + $0x30] sm:$0xff] %v657_v62 }
 0x17f   :  { %754 = vst [vmem:[%s1102_s4 + $0x38] sm:$0xff] %v659_v0 }
 0x1b6   :  { %v695_v53 = vpop.f32.mrb[0].mxu1 }
 0x1b7   :  { %v696_v1 = vadd.f32 %v695_v53, %v598_v56  ;;  %v697_v2 = vpop.f32.mrb[1].mxu1 }
 0x1b8   :  { %v698_v3 = vadd.f32 %v697_v2, %v598_v56  ;;  %v699_v4 = vpop.f32.mrb[2].mxu1 }
 0x1b9   :  { %749 = vst [vmem:[%s1102_s4 + $0x10] sm:$0xff] %v696_v1  ;;  %v700_v5 = vadd.f32 %v699_v4, %v603_v58  ;;  %v701_v6 = vpop.f32.mrb[3].mxu1 }
 0x1ba   :  { %750 = vst [vmem:[%s1102_s4 + $0x18] sm:$0xff] %v698_v3  ;;  %v702_v7 = vadd.f32 %v701_v6, %v603_v58  ;;  %v738_v8 = vpop.f32.mrb[4].mxu0 }
 0x1bb   :  { %755 = vst [vmem:[%s1102_s4 + $0x40] sm:$0xff] %v700_v5  ;;  %v739_v9 = vadd.f32 %v738_v8, %v598_v56  ;;  %v740_v10 = vpop.f32.mrb[5].mxu0 }
 0x1bc   :  { %756 = vst [vmem:[%s1102_s4 + $0x48] sm:$0xff] %v702_v7  ;;  %v741_v11 = vadd.f32 %v740_v10, %v598_v56  ;;  %v742_v12 = vpop.f32.mrb[6].mxu0 }
 0x1bd   :  { %751 = vst [vmem:[%s1102_s4 + $0x20] sm:$0xff] %v739_v9  ;;  %v743_v13 = vadd.f32 %v742_v12, %v603_v58  ;;  %v744_v14 = vpop.f32.mrb[7].mxu0 }
 0x1be   :  { %752 = vst [vmem:[%s1102_s4 + $0x28] sm:$0xff] %v741_v11  ;;  %v745_v15 = vadd.f32 %v744_v14, %v603_v58 }
 0x1bf   :  { %757 = vst [vmem:[%s1102_s4 + $0x50] sm:$0xff] %v743_v13 }
 0x1c0   :  { %758 = vst [vmem:[%s1102_s4 + $0x58] sm:$0xff] %v745_v15 }

</bundles_post_ra>
